<compile_context>
chip_gen: v7x
topology: tpu7x:2x2x1
jax: 0.10.0
libtpu: 0.0.40
codegen_flags: <defaults>
</compile_context>

<pallas_src>
import math

import jax
import jax.numpy as jnp
from jax import lax
from jax.experimental import pallas as pl
from jax.experimental.pallas import tpu as pltpu


def _peg_kernel(x_ref, w_ref, b_ref, o_ref):
    # x_ref/o_ref: (TB, H, W, TC)   w_ref: (3, 3, TC)   b_ref: (1, TC)
    TB, H, W, C = x_ref.shape
    f32 = jnp.float32
    odt = o_ref.dtype

    # Single up-front cast (one pass; bf16 would be upcast per-op on v5e anyway).
    x = x_ref[...].astype(f32)                                 # (TB, H, W, C)

    # Tiny per-block constants (a few KiB, stay in vregs).
    w = w_ref[...].astype(f32)                                 # (3, 3, C)
    bias = b_ref[...].astype(f32).reshape(1, 1, 1, C)
    col = lax.broadcasted_iota(jnp.int32, (1, W, C), 1)
    lmask = (col > 0).astype(f32)                              # kill wrap at w == 0
    rmask = (col < W - 1).astype(f32)                          # kill wrap at w == W-1
    # Fold edge masks into the dx = +-1 tap weights: (1, W, C) each.
    wl = [lmask * w[dy, 0].reshape(1, 1, C) for dy in range(3)]
    wm = [w[dy, 1].reshape(1, 1, C) for dy in range(3)]
    wr = [rmask * w[dy, 2].reshape(1, 1, C) for dy in range(3)]

    def row_taps(xs, dy):
        # Fused 3-tap horizontal conv of input rows `xs` with weight row `dy`.
        tb, hs = xs.shape[0], xs.shape[1]
        xs3 = xs.reshape(tb * hs, W, C)                        # merge major dims (free)
        left = pltpu.roll(xs3, shift=1, axis=1)                # x[w-1] (wrap masked via wl)
        right = pltpu.roll(xs3, shift=W - 1, axis=1)           # x[w+1] (wrap masked via wr)
        out3 = left * wl[dy] + xs3 * wm[dy] + right * wr[dy]
        return out3.reshape(tb, hs, W, C)

    # Each output row range is stored exactly once from one fused f32 expression
    # (bias + residual included) -> no accumulator round-trips, no RMW.
    top = x[:, 0:1] + bias + row_taps(x[:, 0:1], 1)
    if H > 1:
        top = top + row_taps(x[:, 1:2], 2)
    o_ref[:, 0:1, :, :] = top.astype(odt)

    if H > 1:
        bot = (x[:, H - 1:H] + bias + row_taps(x[:, H - 1:H], 1)
               + row_taps(x[:, H - 2:H - 1], 0))
        o_ref[:, H - 1:H, :, :] = bot.astype(odt)

    if H > 2:
        mid = (x[:, 1:H - 1] + bias + row_taps(x[:, 1:H - 1], 1)
               + row_taps(x[:, 0:H - 2], 0) + row_taps(x[:, 2:H], 2))
        o_ref[:, 1:H - 1, :, :] = mid.astype(odt)


def _pick_tiles(B, H, W, C, itemsize, target_bytes):
    """Pick (batch_tile, channel_tile): blocks big enough to amortize per-step
    overhead, channel tile a multiple of 128 (full-lane stores), both dividing
    their axes evenly, and >= 2 total grid steps (v7x megacore / pipelining)."""
    TC = C
    if C % 128 == 0 and H * W * C * itemsize > target_bytes:
        best = 128
        d = 128
        while d <= C:
            if C % d == 0 and H * W * d * itemsize <= target_bytes:
                best = d
            d += 128
        TC = best
    per_block = max(H * W * TC * itemsize, 1)
    TB = max(1, min(B, target_bytes // per_block))
    while B % TB:
        TB -= 1

    def steps(tb, tc):
        return (B // tb) * (C // tc)

    # Prefer shrinking the batch tile to reach >= 2 steps, then the channel tile.
    while steps(TB, TC) < 2 and TB > 1:
        nt = TB // 2
        while nt > 1 and B % nt:
            nt -= 1
        TB = max(nt, 1)
    while steps(TB, TC) < 2 and TC >= 256 and TC % 256 == 0:
        TC //= 2
    return int(TB), int(TC)


def pos_inject_forward(x, w, bias):
    """x: (B, N, C); w: (3, 3, C) depthwise weights; bias: (C,). Returns (B, N, C)."""
    B, N, C = x.shape
    H = int(math.sqrt(N))
    assert H * H == N, "num_tokens must be a perfect square"
    W = H
    orig_C = C

    x_nhwc = x.reshape(B, H, W, C)                    # free: channels already last
    w_hwc = w
    bias2d = bias.reshape(1, C)

    # Pad the channel (lane) axis to a multiple of 128 -> unmasked full-lane stores.
    if C % 128 != 0:
        C_pad = ((C + 127) // 128) * 128
        pad = C_pad - C
        x_nhwc = jnp.pad(x_nhwc, ((0, 0), (0, 0), (0, 0), (0, pad)))
        w_hwc = jnp.pad(w_hwc, ((0, 0), (0, 0), (0, pad)))
        bias2d = jnp.pad(bias2d, ((0, 0), (0, pad)))
        C = C_pad

    # TODO(synk): for W % 8 != 0 (e.g. 7x7 / 14x14 ViT grids) the W-on-sublane
    # layout wastes part of each sublane tile; a (H*W)-flattened sublane layout
    # with row-boundary masks would be denser. Correct either way.

    try:
        vmem_cap = int(pltpu.get_tpu_info().vmem_capacity_bytes)
    except Exception:
        vmem_cap = 128 * 1024 * 1024
    # ~4 MiB blocks on 128-MiB parts (v5e/v6e), ~1.5 MiB on 64-MiB parts (v7x).
    target_bytes = (4 << 20) if vmem_cap >= (96 << 20) else (3 << 19)

    itemsize = x_nhwc.dtype.itemsize
    TB, TC = _pick_tiles(B, H, W, C, itemsize, target_bytes)

    # VMEM budget: double-buffered in/out blocks + f32 in-kernel temporaries + slack.
    blk = TB * H * W * TC * itemsize
    f32_blk = TB * H * W * TC * 4
    needed = 4 * blk + 5 * f32_blk + (2 << 20)
    vmem_limit = int(min(int(0.75 * vmem_cap), max(needed, 16 << 20)))

    grid = (C // TC, B // TB)   # batch innermost: weight/bias blocks stay resident

    out_nhwc = pl.pallas_call(
        _peg_kernel,
        out_shape=jax.ShapeDtypeStruct((B, H, W, C), x.dtype),
        grid_spec=pltpu.PrefetchScalarGridSpec(
            num_scalar_prefetch=0,
            grid=grid,
            in_specs=[
                pl.BlockSpec((TB, H, W, TC), lambda c, b: (b, 0, 0, c)),
                pl.BlockSpec((3, 3, TC), lambda c, b: (0, 0, c)),
                pl.BlockSpec((1, TC), lambda c, b: (0, c)),
            ],
            out_specs=pl.BlockSpec((TB, H, W, TC), lambda c, b: (b, 0, 0, c)),
        ),
        compiler_params=pltpu.CompilerParams(
            dimension_semantics=("parallel", "parallel"),
            vmem_limit_bytes=vmem_limit),
    )(x_nhwc, w_hwc, bias2d)

    if C != orig_C:
        out_nhwc = out_nhwc[..., :orig_C]
    return out_nhwc.reshape(B, N, orig_C)


def _reference(x, w, bias):
    """Pure-JAX reference (lax depthwise conv, f32) for correctness checking."""
    B, N, C = x.shape
    H = int(math.sqrt(N))
    xf = x.astype(jnp.float32).reshape(B, H, H, C)
    filt = w.astype(jnp.float32).reshape(3, 3, 1, C)          # HWIO, I=1 (groups=C)
    y = lax.conv_general_dilated(
        xf, filt,
        window_strides=(1, 1), padding=((1, 1), (1, 1)),
        dimension_numbers=("NHWC", "HWIO", "NHWC"),
        feature_group_count=C)
    y = y + bias.astype(jnp.float32).reshape(1, 1, 1, C) + xf
    return y.reshape(B, N, C)


if __name__ == "__main__":
    def run_case(B, H, C, dtype, tol):
        N = H * H
        key = jax.random.PRNGKey(0)
        kx, kw, kb = jax.random.split(key, 3)
        # Conv2d(C, C, 3, groups=C) init bound: fan_in = 1 * 3 * 3.
        bound = 1.0 / math.sqrt(9.0)
        x = jax.random.normal(kx, (B, N, C), dtype=jnp.float32).astype(dtype)
        w = jax.random.uniform(kw, (3, 3, C), dtype=jnp.float32,
                               minval=-bound, maxval=bound).astype(dtype)
        b = jax.random.uniform(kb, (C,), dtype=jnp.float32,
                               minval=-bound, maxval=bound).astype(dtype)
        out = jax.block_until_ready(pos_inject_forward(x, w, b))
        ref = _reference(x, w, b)
        assert out.shape == (B, N, C)
        ok = jnp.allclose(out.astype(jnp.float32), ref, atol=tol, rtol=tol)
        assert bool(ok), f"mismatch vs reference: B={B} H={H} C={C} dtype={dtype}"

    run_case(2, 8, 128, jnp.float32, 1e-5)    # aligned channels, 2-step grid
    run_case(2, 8, 96, jnp.float32, 1e-5)     # C padded up to 128 (full-lane stores)
    run_case(2, 8, 128, jnp.bfloat16, 5e-2)   # bf16 in, single f32 upcast, f32 taps

    print("KERNEL_OK")
</pallas_src>

<mosaic_0001>
module attributes {stable_mosaic.version = 11 : i64} {
  func.func @_peg_kernel(%arg0: i32, %arg1: i32, %arg2: memref<1x8x8x128xf32, #tpu.memory_space<vmem>>, %arg3: memref<3x3x128xf32, #tpu.memory_space<vmem>>, %arg4: memref<1x128xf32, #tpu.memory_space<vmem>>, %arg5: memref<1x8x8x128xf32, #tpu.memory_space<vmem>>) attributes {dimension_semantics = [#tpu.dimension_semantics<parallel>, #tpu.dimension_semantics<parallel>], iteration_bounds = array<i64: 1, 2>, scalar_prefetch = 0 : i64, scratch_operands = 0 : i64, tpu.core_type = #tpu.core_type<tc>, window_params = [{transform_indices = @transform_0, window_bounds = array<i64: 1, 8, 8, 128>}, {transform_indices = @transform_1, window_bounds = array<i64: 3, 3, 128>}, {transform_indices = @transform_2, window_bounds = array<i64: 1, 128>}, {transform_indices = @transform_3, window_bounds = array<i64: 1, 8, 8, 128>}]} {
    %c0 = arith.constant 0 : index
    %c0_0 = arith.constant 0 : index
    %c0_1 = arith.constant 0 : index
    %c0_2 = arith.constant 0 : index
    %0 = vector.load %arg2[%c0, %c0_0, %c0_1, %c0_2] : memref<1x8x8x128xf32, #tpu.memory_space<vmem>>, vector<1x8x8x128xf32>
    %c0_3 = arith.constant 0 : index
    %c0_4 = arith.constant 0 : index
    %c0_5 = arith.constant 0 : index
    %1 = vector.load %arg3[%c0_3, %c0_4, %c0_5] : memref<3x3x128xf32, #tpu.memory_space<vmem>>, vector<3x3x128xf32>
    %c0_6 = arith.constant 0 : index
    %c0_7 = arith.constant 0 : index
    %2 = vector.load %arg4[%c0_6, %c0_7] : memref<1x128xf32, #tpu.memory_space<vmem>>, vector<1x128xf32>
    %3 = vector.shape_cast %2 : vector<1x128xf32> to vector<1x1x1x128xf32>
    %4 = tpu.iota {dimensions = array<i32: 1>} : vector<1x8x128xi32>
    %c0_i32 = arith.constant 0 : i32
    %5 = vector.broadcast %c0_i32 : i32 to vector<1x8x128xi32>
    %6 = arith.cmpi sgt, %4, %5 : vector<1x8x128xi32>
    %7 = arith.extui %6 : vector<1x8x128xi1> to vector<1x8x128xi32>
    %8 = arith.sitofp %7 : vector<1x8x128xi32> to vector<1x8x128xf32>
    %c7_i32 = arith.constant 7 : i32
    %9 = vector.broadcast %c7_i32 : i32 to vector<1x8x128xi32>
    %10 = arith.cmpi slt, %4, %9 : vector<1x8x128xi32>
    %11 = arith.extui %10 : vector<1x8x128xi1> to vector<1x8x128xi32>
    %12 = arith.sitofp %11 : vector<1x8x128xi32> to vector<1x8x128xf32>
    %13 = vector.extract_strided_slice %1 {offsets = [0, 0, 0], sizes = [1, 1, 128], strides = [1, 1, 1]} : vector<3x3x128xf32> to vector<1x1x128xf32>
    %14 = vector.shape_cast %13 : vector<1x1x128xf32> to vector<128xf32>
    %15 = vector.shape_cast %14 : vector<128xf32> to vector<1x1x128xf32>
    %16 = vector.broadcast %15 : vector<1x1x128xf32> to vector<1x8x128xf32>
    %17 = arith.mulf %8, %16 : vector<1x8x128xf32>
    %18 = vector.extract_strided_slice %1 {offsets = [1, 0, 0], sizes = [1, 1, 128], strides = [1, 1, 1]} : vector<3x3x128xf32> to vector<1x1x128xf32>
    %19 = vector.shape_cast %18 : vector<1x1x128xf32> to vector<128xf32>
    %20 = vector.shape_cast %19 : vector<128xf32> to vector<1x1x128xf32>
    %21 = vector.broadcast %20 : vector<1x1x128xf32> to vector<1x8x128xf32>
    %22 = arith.mulf %8, %21 : vector<1x8x128xf32>
    %23 = vector.extract_strided_slice %1 {offsets = [2, 0, 0], sizes = [1, 1, 128], strides = [1, 1, 1]} : vector<3x3x128xf32> to vector<1x1x128xf32>
    %24 = vector.shape_cast %23 : vector<1x1x128xf32> to vector<128xf32>
    %25 = vector.shape_cast %24 : vector<128xf32> to vector<1x1x128xf32>
    %26 = vector.broadcast %25 : vector<1x1x128xf32> to vector<1x8x128xf32>
    %27 = arith.mulf %8, %26 : vector<1x8x128xf32>
    %28 = vector.extract_strided_slice %1 {offsets = [0, 1, 0], sizes = [1, 1, 128], strides = [1, 1, 1]} : vector<3x3x128xf32> to vector<1x1x128xf32>
    %29 = vector.shape_cast %28 : vector<1x1x128xf32> to vector<128xf32>
    %30 = vector.shape_cast %29 : vector<128xf32> to vector<1x1x128xf32>
    %31 = vector.extract_strided_slice %1 {offsets = [1, 1, 0], sizes = [1, 1, 128], strides = [1, 1, 1]} : vector<3x3x128xf32> to vector<1x1x128xf32>
    %32 = vector.shape_cast %31 : vector<1x1x128xf32> to vector<128xf32>
    %33 = vector.shape_cast %32 : vector<128xf32> to vector<1x1x128xf32>
    %34 = vector.extract_strided_slice %1 {offsets = [2, 1, 0], sizes = [1, 1, 128], strides = [1, 1, 1]} : vector<3x3x128xf32> to vector<1x1x128xf32>
    %35 = vector.shape_cast %34 : vector<1x1x128xf32> to vector<128xf32>
    %36 = vector.shape_cast %35 : vector<128xf32> to vector<1x1x128xf32>
    %37 = vector.extract_strided_slice %1 {offsets = [0, 2, 0], sizes = [1, 1, 128], strides = [1, 1, 1]} : vector<3x3x128xf32> to vector<1x1x128xf32>
    %38 = vector.shape_cast %37 : vector<1x1x128xf32> to vector<128xf32>
    %39 = vector.shape_cast %38 : vector<128xf32> to vector<1x1x128xf32>
    %40 = vector.broadcast %39 : vector<1x1x128xf32> to vector<1x8x128xf32>
    %41 = arith.mulf %12, %40 : vector<1x8x128xf32>
    %42 = vector.extract_strided_slice %1 {offsets = [1, 2, 0], sizes = [1, 1, 128], strides = [1, 1, 1]} : vector<3x3x128xf32> to vector<1x1x128xf32>
    %43 = vector.shape_cast %42 : vector<1x1x128xf32> to vector<128xf32>
    %44 = vector.shape_cast %43 : vector<128xf32> to vector<1x1x128xf32>
    %45 = vector.broadcast %44 : vector<1x1x128xf32> to vector<1x8x128xf32>
    %46 = arith.mulf %12, %45 : vector<1x8x128xf32>
    %47 = vector.extract_strided_slice %1 {offsets = [2, 2, 0], sizes = [1, 1, 128], strides = [1, 1, 1]} : vector<3x3x128xf32> to vector<1x1x128xf32>
    %48 = vector.shape_cast %47 : vector<1x1x128xf32> to vector<128xf32>
    %49 = vector.shape_cast %48 : vector<128xf32> to vector<1x1x128xf32>
    %50 = vector.broadcast %49 : vector<1x1x128xf32> to vector<1x8x128xf32>
    %51 = arith.mulf %12, %50 : vector<1x8x128xf32>
    %52 = vector.extract_strided_slice %0 {offsets = [0, 0, 0, 0], sizes = [1, 1, 8, 128], strides = [1, 1, 1, 1]} : vector<1x8x8x128xf32> to vector<1x1x8x128xf32>
    %53 = vector.broadcast %3 : vector<1x1x1x128xf32> to vector<1x1x8x128xf32>
    %54 = arith.addf %52, %53 : vector<1x1x8x128xf32>
    %55 = vector.extract_strided_slice %0 {offsets = [0, 0, 0, 0], sizes = [1, 1, 8, 128], strides = [1, 1, 1, 1]} : vector<1x8x8x128xf32> to vector<1x1x8x128xf32>
    %56 = vector.shape_cast %55 : vector<1x1x8x128xf32> to vector<1x8x128xf32>
    %c1_i32 = arith.constant 1 : i32
    %57 = tpu.dynamic_rotate %56 by %c1_i32 dim 1 : vector<1x8x128xf32>, i32 -> vector<1x8x128xf32>
    %c7_i32_8 = arith.constant 7 : i32
    %58 = tpu.dynamic_rotate %56 by %c7_i32_8 dim 1 : vector<1x8x128xf32>, i32 -> vector<1x8x128xf32>
    %59 = arith.mulf %57, %22 : vector<1x8x128xf32>
    %60 = vector.broadcast %33 : vector<1x1x128xf32> to vector<1x8x128xf32>
    %61 = arith.mulf %56, %60 : vector<1x8x128xf32>
    %62 = arith.addf %59, %61 : vector<1x8x128xf32>
    %63 = arith.mulf %58, %46 : vector<1x8x128xf32>
    %64 = arith.addf %62, %63 : vector<1x8x128xf32>
    %65 = vector.shape_cast %64 : vector<1x8x128xf32> to vector<1x1x8x128xf32>
    %66 = arith.addf %54, %65 : vector<1x1x8x128xf32>
    %67 = vector.extract_strided_slice %0 {offsets = [0, 1, 0, 0], sizes = [1, 1, 8, 128], strides = [1, 1, 1, 1]} : vector<1x8x8x128xf32> to vector<1x1x8x128xf32>
    %68 = vector.shape_cast %67 : vector<1x1x8x128xf32> to vector<1x8x128xf32>
    %c1_i32_9 = arith.constant 1 : i32
    %69 = tpu.dynamic_rotate %68 by %c1_i32_9 dim 1 : vector<1x8x128xf32>, i32 -> vector<1x8x128xf32>
    %c7_i32_10 = arith.constant 7 : i32
    %70 = tpu.dynamic_rotate %68 by %c7_i32_10 dim 1 : vector<1x8x128xf32>, i32 -> vector<1x8x128xf32>
    %71 = arith.mulf %69, %27 : vector<1x8x128xf32>
    %72 = vector.broadcast %36 : vector<1x1x128xf32> to vector<1x8x128xf32>
    %73 = arith.mulf %68, %72 : vector<1x8x128xf32>
    %74 = arith.addf %71, %73 : vector<1x8x128xf32>
    %75 = arith.mulf %70, %51 : vector<1x8x128xf32>
    %76 = arith.addf %74, %75 : vector<1x8x128xf32>
    %77 = vector.shape_cast %76 : vector<1x8x128xf32> to vector<1x1x8x128xf32>
    %78 = arith.addf %66, %77 : vector<1x1x8x128xf32>
    %c0_11 = arith.constant 0 : index
    %c0_12 = arith.constant 0 : index
    %c0_13 = arith.constant 0 : index
    %c0_14 = arith.constant 0 : index
    %79 = vector.load %arg5[%c0_11, %c0_12, %c0_13, %c0_14] : memref<1x8x8x128xf32, #tpu.memory_space<vmem>>, vector<1x1x8x128xf32>
    tpu.vector_store %arg5[%c0_11, %c0_12, %c0_13, %c0_14], %78 {strides = array<i32>} : memref<1x8x8x128xf32, #tpu.memory_space<vmem>>, vector<1x1x8x128xf32>,
    %80 = vector.extract_strided_slice %0 {offsets = [0, 7, 0, 0], sizes = [1, 1, 8, 128], strides = [1, 1, 1, 1]} : vector<1x8x8x128xf32> to vector<1x1x8x128xf32>
    %81 = vector.broadcast %3 : vector<1x1x1x128xf32> to vector<1x1x8x128xf32>
    %82 = arith.addf %80, %81 : vector<1x1x8x128xf32>
    %83 = vector.extract_strided_slice %0 {offsets = [0, 7, 0, 0], sizes = [1, 1, 8, 128], strides = [1, 1, 1, 1]} : vector<1x8x8x128xf32> to vector<1x1x8x128xf32>
    %84 = vector.shape_cast %83 : vector<1x1x8x128xf32> to vector<1x8x128xf32>
    %c1_i32_15 = arith.constant 1 : i32
    %85 = tpu.dynamic_rotate %84 by %c1_i32_15 dim 1 : vector<1x8x128xf32>, i32 -> vector<1x8x128xf32>
    %c7_i32_16 = arith.constant 7 : i32
    %86 = tpu.dynamic_rotate %84 by %c7_i32_16 dim 1 : vector<1x8x128xf32>, i32 -> vector<1x8x128xf32>
    %87 = arith.mulf %85, %22 : vector<1x8x128xf32>
    %88 = vector.broadcast %33 : vector<1x1x128xf32> to vector<1x8x128xf32>
    %89 = arith.mulf %84, %88 : vector<1x8x128xf32>
    %90 = arith.addf %87, %89 : vector<1x8x128xf32>
    %91 = arith.mulf %86, %46 : vector<1x8x128xf32>
    %92 = arith.addf %90, %91 : vector<1x8x128xf32>
    %93 = vector.shape_cast %92 : vector<1x8x128xf32> to vector<1x1x8x128xf32>
    %94 = arith.addf %82, %93 : vector<1x1x8x128xf32>
    %95 = vector.extract_strided_slice %0 {offsets = [0, 6, 0, 0], sizes = [1, 1, 8, 128], strides = [1, 1, 1, 1]} : vector<1x8x8x128xf32> to vector<1x1x8x128xf32>
    %96 = vector.shape_cast %95 : vector<1x1x8x128xf32> to vector<1x8x128xf32>
    %c1_i32_17 = arith.constant 1 : i32
    %97 = tpu.dynamic_rotate %96 by %c1_i32_17 dim 1 : vector<1x8x128xf32>, i32 -> vector<1x8x128xf32>
    %c7_i32_18 = arith.constant 7 : i32
    %98 = tpu.dynamic_rotate %96 by %c7_i32_18 dim 1 : vector<1x8x128xf32>, i32 -> vector<1x8x128xf32>
    %99 = arith.mulf %97, %17 : vector<1x8x128xf32>
    %100 = vector.broadcast %30 : vector<1x1x128xf32> to vector<1x8x128xf32>
    %101 = arith.mulf %96, %100 : vector<1x8x128xf32>
    %102 = arith.addf %99, %101 : vector<1x8x128xf32>
    %103 = arith.mulf %98, %41 : vector<1x8x128xf32>
    %104 = arith.addf %102, %103 : vector<1x8x128xf32>
    %105 = vector.shape_cast %104 : vector<1x8x128xf32> to vector<1x1x8x128xf32>
    %106 = arith.addf %94, %105 : vector<1x1x8x128xf32>
    %c0_19 = arith.constant 0 : index
    %c7 = arith.constant 7 : index
    %c0_20 = arith.constant 0 : index
    %c0_21 = arith.constant 0 : index
    %107 = vector.load %arg5[%c0_19, %c7, %c0_20, %c0_21] : memref<1x8x8x128xf32, #tpu.memory_space<vmem>>, vector<1x1x8x128xf32>
    tpu.vector_store %arg5[%c0_19, %c7, %c0_20, %c0_21], %106 {strides = array<i32>} : memref<1x8x8x128xf32, #tpu.memory_space<vmem>>, vector<1x1x8x128xf32>,
    %108 = vector.extract_strided_slice %0 {offsets = [0, 1, 0, 0], sizes = [1, 6, 8, 128], strides = [1, 1, 1, 1]} : vector<1x8x8x128xf32> to vector<1x6x8x128xf32>
    %109 = vector.broadcast %3 : vector<1x1x1x128xf32> to vector<1x6x8x128xf32>
    %110 = arith.addf %108, %109 : vector<1x6x8x128xf32>
    %111 = vector.extract_strided_slice %0 {offsets = [0, 1, 0, 0], sizes = [1, 6, 8, 128], strides = [1, 1, 1, 1]} : vector<1x8x8x128xf32> to vector<1x6x8x128xf32>
    %112 = vector.shape_cast %111 : vector<1x6x8x128xf32> to vector<6x8x128xf32>
    %c1_i32_22 = arith.constant 1 : i32
    %113 = tpu.dynamic_rotate %112 by %c1_i32_22 dim 1 : vector<6x8x128xf32>, i32 -> vector<6x8x128xf32>
    %c7_i32_23 = arith.constant 7 : i32
    %114 = tpu.dynamic_rotate %112 by %c7_i32_23 dim 1 : vector<6x8x128xf32>, i32 -> vector<6x8x128xf32>
    %115 = vector.broadcast %22 : vector<1x8x128xf32> to vector<6x8x128xf32>
    %116 = arith.mulf %113, %115 : vector<6x8x128xf32>
    %117 = vector.broadcast %33 : vector<1x1x128xf32> to vector<6x8x128xf32>
    %118 = arith.mulf %112, %117 : vector<6x8x128xf32>
    %119 = arith.addf %116, %118 : vector<6x8x128xf32>
    %120 = vector.broadcast %46 : vector<1x8x128xf32> to vector<6x8x128xf32>
    %121 = arith.mulf %114, %120 : vector<6x8x128xf32>
    %122 = arith.addf %119, %121 : vector<6x8x128xf32>
    %123 = vector.shape_cast %122 : vector<6x8x128xf32> to vector<1x6x8x128xf32>
    %124 = arith.addf %110, %123 : vector<1x6x8x128xf32>
    %125 = vector.extract_strided_slice %0 {offsets = [0, 0, 0, 0], sizes = [1, 6, 8, 128], strides = [1, 1, 1, 1]} : vector<1x8x8x128xf32> to vector<1x6x8x128xf32>
    %126 = vector.shape_cast %125 : vector<1x6x8x128xf32> to vector<6x8x128xf32>
    %c1_i32_24 = arith.constant 1 : i32
    %127 = tpu.dynamic_rotate %126 by %c1_i32_24 dim 1 : vector<6x8x128xf32>, i32 -> vector<6x8x128xf32>
    %c7_i32_25 = arith.constant 7 : i32
    %128 = tpu.dynamic_rotate %126 by %c7_i32_25 dim 1 : vector<6x8x128xf32>, i32 -> vector<6x8x128xf32>
    %129 = vector.broadcast %17 : vector<1x8x128xf32> to vector<6x8x128xf32>
    %130 = arith.mulf %127, %129 : vector<6x8x128xf32>
    %131 = vector.broadcast %30 : vector<1x1x128xf32> to vector<6x8x128xf32>
    %132 = arith.mulf %126, %131 : vector<6x8x128xf32>
    %133 = arith.addf %130, %132 : vector<6x8x128xf32>
    %134 = vector.broadcast %41 : vector<1x8x128xf32> to vector<6x8x128xf32>
    %135 = arith.mulf %128, %134 : vector<6x8x128xf32>
    %136 = arith.addf %133, %135 : vector<6x8x128xf32>
    %137 = vector.shape_cast %136 : vector<6x8x128xf32> to vector<1x6x8x128xf32>
    %138 = arith.addf %124, %137 : vector<1x6x8x128xf32>
    %139 = vector.extract_strided_slice %0 {offsets = [0, 2, 0, 0], sizes = [1, 6, 8, 128], strides = [1, 1, 1, 1]} : vector<1x8x8x128xf32> to vector<1x6x8x128xf32>
    %140 = vector.shape_cast %139 : vector<1x6x8x128xf32> to vector<6x8x128xf32>
    %c1_i32_26 = arith.constant 1 : i32
    %141 = tpu.dynamic_rotate %140 by %c1_i32_26 dim 1 : vector<6x8x128xf32>, i32 -> vector<6x8x128xf32>
    %c7_i32_27 = arith.constant 7 : i32
    %142 = tpu.dynamic_rotate %140 by %c7_i32_27 dim 1 : vector<6x8x128xf32>, i32 -> vector<6x8x128xf32>
    %143 = vector.broadcast %27 : vector<1x8x128xf32> to vector<6x8x128xf32>
    %144 = arith.mulf %141, %143 : vector<6x8x128xf32>
    %145 = vector.broadcast %36 : vector<1x1x128xf32> to vector<6x8x128xf32>
    %146 = arith.mulf %140, %145 : vector<6x8x128xf32>
    %147 = arith.addf %144, %146 : vector<6x8x128xf32>
    %148 = vector.broadcast %51 : vector<1x8x128xf32> to vector<6x8x128xf32>
    %149 = arith.mulf %142, %148 : vector<6x8x128xf32>
    %150 = arith.addf %147, %149 : vector<6x8x128xf32>
    %151 = vector.shape_cast %150 : vector<6x8x128xf32> to vector<1x6x8x128xf32>
    %152 = arith.addf %138, %151 : vector<1x6x8x128xf32>
    %c0_28 = arith.constant 0 : index
    %c1 = arith.constant 1 : index
    %c0_29 = arith.constant 0 : index
    %c0_30 = arith.constant 0 : index
    %153 = vector.load %arg5[%c0_28, %c1, %c0_29, %c0_30] : memref<1x8x8x128xf32, #tpu.memory_space<vmem>>, vector<1x6x8x128xf32>
    tpu.vector_store %arg5[%c0_28, %c1, %c0_29, %c0_30], %152 {strides = array<i32>} : memref<1x8x8x128xf32, #tpu.memory_space<vmem>>, vector<1x6x8x128xf32>,
    return
  }
  func.func @transform_0(%arg0: i32, %arg1: i32) -> (i32, i32, i32, i32) {
    %c0_i32 = arith.constant 0 : i32
    %c0_i32_0 = arith.constant 0 : i32
    %c0_i32_1 = arith.constant 0 : i32
    return %arg1, %c0_i32, %c0_i32_0, %arg0 : i32, i32, i32, i32
  }
  func.func @transform_1(%arg0: i32, %arg1: i32) -> (i32, i32, i32) {
    %c0_i32 = arith.constant 0 : i32
    %c0_i32_0 = arith.constant 0 : i32
    %c0_i32_1 = arith.constant 0 : i32
    return %c0_i32, %c0_i32_0, %arg0 : i32, i32, i32
  }
  func.func @transform_2(%arg0: i32, %arg1: i32) -> (i32, i32) {
    %c0_i32 = arith.constant 0 : i32
    %c0_i32_0 = arith.constant 0 : i32
    return %c0_i32, %arg0 : i32, i32
  }
  func.func @transform_3(%arg0: i32, %arg1: i32) -> (i32, i32, i32, i32) {
    %c0_i32 = arith.constant 0 : i32
    %c0_i32_0 = arith.constant 0 : i32
    %c0_i32_1 = arith.constant 0 : i32
    return %arg1, %c0_i32, %c0_i32_0, %arg0 : i32, i32, i32, i32
  }
}

</mosaic_0001>

<bundles_post_ra>
// kernel: tpu_custom_call.1
= control target key start
LH: loop header
LB: loop body
LE: loop exit
PB: predicated region body
PF: predicated region fallthrough
CT: control target
= control target key end

     0   :  { %8 = vsyncpa [#allocation3], 0  ;;  %s1309_s0 = inlined_call_operand.hbm [shape: f32[2,8,8,128], index: 0, kind: input, shape index: {}]   ;;  %s1310_s1 = inlined_call_operand.hbm [shape: f32[3,3,128], index: 1, kind: input, shape index: {}]   ;;  %s1311_s2 = inlined_call_operand.vmem [shape: f32[1,128], index: 2, kind: input, shape index: {}]   ;;  %s1312_s3 = inlined_call_operand.hbm [shape: f32[2,8,8,128], index: 3, kind: output, shape index: {}]  }
   0x1   :  { %10 = vsyncpa [#allocation3 + $0x1], 0 }
   0x2   :  { %11 = vsyncpa [#allocation6], 0 }
   0x3   :  { %12 = vsyncpa [#allocation4], 0 }
   0x4   :  { %14 = vsyncpa [#allocation4 + $0x1], 0  ;;  %s886_s12 = smov 0   ;;  %s888_s13 = smov 0  }
   0x5   :  { %s890_s14 = smov 0   ;;  %s892_s15 = smov 0  }
   0x6   :  { %s894_s16 = smov 0   ;;  %s896_s17 = smov 0  }
   0x7 LB: > { %s600_s18 = sadd.s32 4294967295, %s854_s17   ;;  %s601_s19 = sadd.s32 4294967294, %s854_s17   ;;  %s854_s17 = sphi %s896_s17, %s20_s17   ;;  %s850_s16 = sphi %s894_s16, %s1336_s16   ;;  %s846_s15 = sphi %s892_s15, %s1335_s15   ;;  %s842_s14 = sphi %s890_s14, %s1334_s14   ;;  %s838_s13 = sphi %s888_s13, %s1333_s13   ;;  %s834_s12 = sphi %s886_s12, %s1332_s12  }
   0x8   : > { %p54_p0 = scmp.ne.s32.totalorder %s838_s13, %s834_s12  ;;  %p920_p1 = scmp.eq.s32.totalorder %s600_s18, 0 }
   0x9   : > { %p924_p2 = scmp.eq.s32.totalorder %s600_s18, 1  ;;  %p138_p3 = scmp.eq.s32.totalorder %s601_s19, 1 }
   0xa   : > { %s1317_s20 = scalar_select %p920_p1, 1, 0 }
   0xb   : > { %s1318_s21 = scalar_select %p924_p2, 1, 0 }
   0xc   : > { %p930_p4 = por %p920_p1, %p54_p0  ;;  %p602_p5 = scmp.ge.s32.totalorder %s854_s17, 1 }
   0xd   : > { %p935_p6 = por %p138_p3, %p54_p0  ;;  %p145_p7 = scmp.lt.s32.totalorder %s854_s17, 3 }
   0xe   : > { %s1319_s22 = scalar_select %p930_p4, 1, 0 }
   0xf   : > { %s1320_s23 = scalar_select %p935_p6, 1, 0 }
  0x10   : > { %p940_p8 = pnand %p602_p5, %p145_p7  ;;  %s856_s25 = smov [#allocation5]  }
  0x11   : > { %s159_s26 = sshll.u32 %s856_s25, 4  ;;  %s29_s28 = sadd.s32 1, %s850_s16  ;;  %s160_s26 = int_to_ptr.vmem [resolvable:$true] %s159_s26 }
  0x12   : > { %s1321_s24 = scalar_select %p940_p8, 1, 0 }
  0x13   : > { %p638_p9 = pneg %p940_p8  ;;  %s710_s4 = scalar_lea.hbm %s1310_s1, 192 }
  0x14   : > { %p711_p12 = scmp.ne.s32.totalorder %s1310_s1, %s710_s4  ;;  %p717_p5 = scmp.lt.u32.totalorder %s710_s4, %s1310_s1 }
  0x15   : > { %p949_p11 = pnand %p638_p9, %p920_p1 }
  0x17   : > { %p712_p13 = pneg %p949_p11 }
  0x19   : > { %p713_p0 = pnand %p712_p13, %p711_p12 }
  0x1b   : > { %p714_p3 = pneg %p713_p0 }
  0x1d   : > { %p719_p7 = pnand %p717_p5, %p714_p3 }
  0x1f   : > { %722 = shalt.err (!%p719_p7)
}
  0x20   : > { %s723_s9 = scalar_lea.vmem %s160_s26, 192  ;;  %p731_p1 = scmp.lt.s32.totalorder %s160_s26, %s160_s26 }
  0x21   : > { %p724_p9 = scmp.ne.s32.totalorder %s160_s26, %s723_s9  ;;  %p732_p4 = scmp.lt.s32.totalorder %s723_s9, %s723_s9 }
  0x23   : > { %p726_p10 = pnand %p724_p9, %p712_p13  ;;  %p733_p8 = por %p732_p4, %p731_p1 }
  0x25   : > { %p727_p6 = pneg %p726_p10 }
  0x27   : > { %p734_p2 = pnand %p733_p8, %p727_p6 }
  0x29   : > { %737 = shalt.err (!%p734_p2)
}
  0x2a   : > { %s857_s10 = smov 64   ;;  %s858_s11 = smov 4  }
  0x2b   : > { %641 = dma.hbm_to_vmem [thread:$0]  (!%p949_p11), %s1310_s1, 192, %s160_s26, [#allocation6], %s857_s10, %s857_s10, %s858_s11  }
  0x2c   : > { %p30_p1 = scmp.ge.s32.totalorder %s29_s28, 2  ;;  %s41_s25 = sadd.s32 1, %s842_s14 }
  0x2d   : > { %p48_p2 = scmp.ne.s32.totalorder %s842_s14, %s838_s13  ;;  %p49_p4 = scmp.eq.s32.totalorder %s854_s17, 0 }
  0x2e   : > { %s1338_s28 = smov (%p30_p1, %s29_s28), 0  ;;  %p1324_p8 = scmp.ne.s32.totalorder %s1318_s21, 0 }
  0x2f   : > { %p976_p6 = por %p49_p4, %p48_p2  ;;  %s36_s27 = ssub.s32 %s850_s16, %s1338_s28 }
  0x30   : > { %p982_p10 = por %p1324_p8, %p48_p2  ;;  %p651_p12 = scmp.lt.s32.totalorder %s854_s17, 2 }
  0x31   : > { %p39_p11 = scmp.eq.s32.totalorder %s36_s27, 0  ;;  %s179_s26 = sand.u32 1, %s842_s14  }
  0x32   : > { %s606_s4 = sshll.u32 %s179_s26, 6  ;;  %s628_s6 = sshll.u32 %s850_s16, 10 }
  0x33   : > { %s991_s5 = scalar_select %p39_p11, %s842_s14, %s41_s25  }
  0x34   : > { %s997_s9 = scalar_lea.hbm %s1309_s0, %s628_s6  ;;  %s183_s21 = scalar_lea.vmem [#allocation2], %s606_s4 }
  0x35   : > { %s191_s10 = sshll.u32 %s183_s21, 4  ;;  %p1003_p13 = pnand %p651_p12, %p976_p6  ;;  %s999_s10 = int_to_ptr.vmem [resolvable:$true] %s191_s10 }
  0x36   : > { %s1007_s18 = scalar_lea.sflag [#allocation3], %s179_s26  ;;  %s738_s19 = scalar_lea.hbm %s997_s9, 1024 }
  0x37   : > { %p739_p0 = scmp.ne.s32.totalorder %s997_s9, %s738_s19  ;;  %p740_p3 = pneg %p1003_p13 }
  0x38   : > { %s743_s29 = scalar_lea.hbm %s1309_s0, 2048  ;;  %p744_p9 = scmp.lt.u32.totalorder %s997_s9, %s1309_s0 }
  0x39   : > { %p741_p5 = pnand %p740_p3, %p739_p0  ;;  %p745_p1 = scmp.lt.u32.totalorder %s743_s29, %s738_s19 }
  0x3a   : > { %p747_p4 = scmp.lt.u32.totalorder %s738_s19, %s997_s9 }
  0x3b   : > { %p742_p7 = pneg %p741_p5  ;;  %p746_p2 = por %p745_p1, %p744_p9 }
  0x3d   : > { %p748_p6 = por %p747_p4, %p746_p2 }
  0x3f   : > { %p749_p8 = pnand %p748_p6, %p742_p7 }
  0x41   : > { %752 = shalt.err (!%p749_p8)
}
  0x42   : > { %s753_s26 = scalar_lea.vmem %s999_s10, 1024  ;;  %s859_s7 = smov [#allocation2]  }
  0x43   : > { %p754_p12 = scmp.ne.s32.totalorder %s999_s10, %s753_s26  ;;  %s758_s8 = sshll.u32 %s859_s7, 4  ;;  %s759_s8 = int_to_ptr.vmem [resolvable:$false] %s758_s8 }
  0x44   : > { %s760_s21 = scalar_lea.vmem %s759_s8, 2048  ;;  %p761_p5 = scmp.lt.s32.totalorder %s999_s10, %s759_s8 }
  0x45   : > { %p756_p11 = pnand %p754_p12, %p740_p3  ;;  %p762_p9 = scmp.lt.s32.totalorder %s760_s21, %s753_s26 }
  0x47   : > { %p757_p0 = pneg %p756_p11  ;;  %p763_p1 = por %p762_p9, %p761_p5 }
  0x49   : > { %p764_p2 = pnand %p763_p1, %p757_p0 }
  0x4b   : > { %767 = shalt.err (!%p764_p2)
}
  0x4c   : > { %s860_s19 = smov 128   ;;  %s861_s25 = smov 8  }
  0x4d   : > { %645 = dma.hbm_to_vmem [thread:$0]  (!%p1003_p13), %s997_s9, 1024, %s999_s10, %s1007_s18, %s860_s19, %s860_s19, %s861_s25  }
  0x4e   : > { %p1327_p3 = scmp.ne.s32.totalorder %s1321_s24, 0 }
  0x4f   : > { %s1038_s27 = sand.u32 (!%p1327_p3), 1, %s838_s13   ;;  %p1328_p7 = scmp.ne.s32.totalorder (!%p1327_p3), %s1319_s22, 0 }
  0x50   : > { %203 = sbr.rel (%p1327_p3) target bundleno = 158 (0x9e), region = 32  ;;  %s610_s29 = sshll.u32 (!%p1327_p3), %s1038_s27, 6 }
  0x51   : > { %s206_s4 = scalar_lea.sflag (!%p1327_p3), [#allocation3], %s1038_s27  ;;  %s1044_s6 = scalar_lea.vmem (!%p1327_p3), [#allocation2], %s610_s29 }
  0x57   : > { %821 = dma.done.wait (%p1328_p7), %s206_s4, 1024  }
  0x58   : > { %823 = vsyncadd (%p1328_p7), %s206_s4, 4294966272  ;;  %p1329_p13 = scmp.ne.s32.totalorder %s1317_s20, 0 }
  0x5a   : > { %825 = dma.done.wait (%p1329_p13), [#allocation6], 192  }
  0x5b   : > { %827 = vsyncadd (%p1329_p13), [#allocation6], 4294967104  ;;  %v254_v0 = vlaneseq  ;;  %v1055_v5 = vld [vmem:[%s1044_s6] sm:$0xff]  ;;  %v1058_v6 = vld [vmem:[%s1044_s6 + $0x8] sm:$0xff]  ;;  %v862_v8 = vmov 0.0   ;;  %s1155_s24 = scalar_lea.vmem [#allocation7], %s610_s29 }
  0x5c   : > { %v251_v7 = vld [vmem:[#allocation5 + $0x4] sm:$0x7]  ;;  %v252_v11 = vld [vmem:[#allocation5 + $0x8] sm:$0x7]  ;;  %v1063_v12 = vld [vmem:[%s1311_s2] ss:$0 sm:$0xff] }
  0x5d   : > { %v255_v1 = vshrl.u32 %v254_v0, 7  ;;  %v299_v15 = vrot.slane %v1055_v5, 7  ;;  %v300_v16 = vrot.slane %v1055_v5, 1  ;;  %v298_v19 = vadd.f32 %v1063_v12, %v1055_v5  ;;  %v250_v21 = vld [vmem:[#allocation5] sm:$0x7]  ;;  %v1090_v30 = vld [vmem:[%s1044_s6 + $0x38] sm:$0xff] }
  0x5e   : > { %v1076_v24 = vrot.slane %v1058_v6, 7  ;;  %v1079_v25 = vrot.slane %v1058_v6, 1  ;;  %v1095_v33 = vld [vmem:[%s1044_s6 + $0x30] sm:$0xff]  ;;  %v324_v39 = vadd.f32 %v1063_v12, %v1090_v30  ;;  %v325_v43 = vrot.slane %v1090_v30, 7  ;;  %s491_s9 = sshll.u32 %s1155_s24, 4  ;;  %s629_s10 = sshll.u32 %s846_s15, 10  ;;  %s1254_s9 = int_to_ptr.vmem [resolvable:$true] %s491_s9 }
  0x5f   : > { %vm256_vm0 = vcmp.gt.s32.totalorder %v255_v1, 0  ;;  %vm259_vm1 = vcmp.lt.s32.totalorder %v255_v1, 7  ;;  %v264_v2 = vsub.s32 0, %v255_v1  ;;  %v279_v3 = vsub.s32 2, %v255_v1  ;;  %v1125_v52 = vld [vmem:[%s1044_s6 + $0x10] sm:$0xff]  ;;  %s1259_s26 = scalar_lea.hbm %s1312_s3, %s629_s10  ;;  %s477_s7 = scalar_lea.sflag [#allocation4], %s1038_s27 }
  0x60   : > { %v304_v4 = vsub.s32 1, %v255_v1  ;;  %v613_v9 = vsel %vm256_vm0, 1.0, %v862_v8  ;;  %v614_v10 = vsel %vm259_vm1, 1.0, %v862_v8  ;;  %v326_v45 = vrot.slane %v1090_v30, 1  ;;  %s768_s8 = scalar_lea.vmem %s1254_s9, 1024  ;;  %s863_s15 = smov [#allocation7]  }
  0x61   : > { %v270_v13 = vrot.slane %v251_v7, %v264_v2  ;;  %v285_v14 = vrot.slane %v251_v7, %v279_v3  ;;  %v275_v17 = vrot.slane %v252_v11, %v264_v2  ;;  %v290_v18 = vrot.slane %v252_v11, %v279_v3  ;;  %p769_p4 = scmp.ne.s32.totalorder %s1254_s9, %s768_s8  ;;  %s772_s21 = sshll.u32 %s863_s15, 4  ;;  %s773_s21 = int_to_ptr.vmem [resolvable:$false] %s772_s21 }
  0x62   : > { %v1069_v20 = vrot.slane %v251_v7, %v304_v4  ;;  %v1087_v29 = vrot.slane %v252_v11, %v304_v4  ;;  %v265_v34 = vrot.slane %v250_v21, %v264_v2  ;;  %v280_v35 = vrot.slane %v250_v21, %v279_v3  ;;  %v1151_v11 = vld [vmem:[%s1044_s6 + $0x18] sm:$0xff]  ;;  %s774_s19 = scalar_lea.vmem %s773_s21, 2048  ;;  %p775_p12 = scmp.lt.s32.totalorder %s1254_s9, %s773_s21 }
  0x63   : > { %v1071_v22 = vmul.f32 %v613_v9, %v270_v13  ;;  %v1073_v23 = vmul.f32 %v614_v10, %v285_v14  ;;  %v1081_v26 = vmul.f32 %v613_v9, %v275_v17  ;;  %v1083_v27 = vmul.f32 %v614_v10, %v290_v18  ;;  %p770_p6 = pnand %p769_p4, %p982_p10  ;;  %p776_p11 = scmp.lt.s32.totalorder %s774_s19, %s768_s8 }
  0x64   : > { %v306_v28 = vmul.f32 %v1069_v20, %v1055_v5  ;;  %v318_v37 = vmul.f32 %v1087_v29, %v1058_v6  ;;  %v1105_v41 = vmul.f32 %v613_v9, %v265_v34  ;;  %v1107_v42 = vmul.f32 %v614_v10, %v280_v35 }
  0x65   : > { %v301_v31 = vmul.f32 %v299_v15, %v1071_v22  ;;  %v308_v32 = vmul.f32 %v300_v16, %v1073_v23  ;;  %v313_v36 = vmul.f32 %v1076_v24, %v1081_v26  ;;  %v320_v38 = vmul.f32 %v1079_v25, %v1083_v27  ;;  %p771_p8 = pneg %p770_p6  ;;  %p777_p0 = por %p776_p11, %p775_p12 }
  0x66   : > { %v328_v46 = vmul.f32 %v1069_v20, %v1090_v30  ;;  %v1114_v47 = vrot.slane %v1095_v33, 7  ;;  %v327_v49 = vmul.f32 %v325_v43, %v1071_v22  ;;  %v1120_v50 = vrot.slane %v1095_v33, 1 }
  0x67   : > { %v307_v40 = vadd.f32 %v306_v28, %v301_v31  ;;  %v319_v44 = vadd.f32 %v318_v37, %v313_v36  ;;  %v1122_v51 = vrot.slane %v250_v21, %v304_v4  ;;  %v330_v54 = vmul.f32 %v326_v45, %v1073_v23  ;;  %p778_p5 = pnand %p777_p0, %p771_p8 }
  0x68   : > { %v335_v55 = vmul.f32 %v1114_v47, %v1105_v41  ;;  %v347_v56 = vadd.f32 %v1063_v12, %v1058_v6  ;;  %v329_v58 = vadd.f32 %v328_v46, %v327_v49  ;;  %v342_v60 = vmul.f32 %v1120_v50, %v1107_v42  ;;  %v1176_v46 = vld [vmem:[%s1044_s6 + $0x20] sm:$0xff] }
  0x69   : > { %v309_v48 = vadd.f32 %v308_v32, %v307_v40  ;;  %v321_v53 = vadd.f32 %v320_v38, %v319_v44  ;;  %v340_v59 = vmul.f32 %v1122_v51, %v1095_v33  ;;  %v353_v61 = vrot.slane %v1125_v52, 7 }
  0x6a   : > { %v357_v62 = vrot.slane %v1125_v52, 1  ;;  %v361_v63 = vmul.f32 %v1076_v24, %v1071_v22  ;;  %v367_v0 = vmul.f32 %v1069_v20, %v1058_v6  ;;  %v331_v2 = vadd.f32 %v330_v54, %v329_v58 }
  0x6b   : > { %v310_v57 = vadd.f32 %v309_v48, %v298_v19  ;;  %v341_v3 = vadd.f32 %v340_v59, %v335_v55  ;;  %v379_v4 = vmul.f32 %v1079_v25, %v1073_v23  ;;  %v397_v8 = vmul.f32 %v299_v15, %v1105_v41 }
  0x6c   : > { %v373_v7 = vadd.f32 %v367_v0, %v361_v63  ;;  %v403_v9 = vmul.f32 %v1122_v51, %v1055_v5  ;;  %v415_v10 = vmul.f32 %v300_v16, %v1107_v42  ;;  %v332_v13 = vadd.f32 %v331_v2, %v324_v39 }
  0x6d   : > { %v322_v1 = vadd.f32 %v321_v53, %v310_v57  ;;  %v343_v14 = vadd.f32 %v342_v60, %v341_v3  ;;  %v433_v17 = vmul.f32 %v353_v61, %v1081_v26  ;;  %v439_v15 = vmul.f32 %v1087_v29, %v1125_v52 }
  0x6e   : > { %v385_v18 = vadd.f32 %v379_v4, %v373_v7  ;;  %v409_v19 = vadd.f32 %v403_v9, %v397_v8  ;;  %v451_v5 = vmul.f32 %v357_v62, %v1083_v27  ;;  %v348_v16 = vadd.f32 %v1063_v12, %v1125_v52  ;;  %v247_v8 = vld [vmem:[%s1044_s6 + $0x28] sm:$0xff] }
  0x6f   : > { %323 = vst [vmem:[%s1155_s24] sm:$0xff] %v322_v1  ;;  %v344_v21 = vadd.f32 %v343_v14, %v332_v13  ;;  %v445_v28 = vadd.f32 %v439_v15, %v433_v17  ;;  %v354_v31 = vrot.slane %v1151_v11, 7  ;;  %v358_v32 = vrot.slane %v1151_v11, 1 }
  0x70   : > { %v391_v34 = vadd.f32 %v385_v18, %v347_v56  ;;  %v421_v35 = vadd.f32 %v415_v10, %v409_v19  ;;  %v362_v36 = vmul.f32 %v353_v61, %v1071_v22  ;;  %v368_v37 = vmul.f32 %v1069_v20, %v1125_v52 }
  0x71   : > { %616 = vst [vmem:[%s1155_s24 + $0x38] sm:$0xff] %v344_v21  ;;  %v457_v38 = vadd.f32 %v451_v5, %v445_v28  ;;  %v380_v39 = vmul.f32 %v357_v62, %v1073_v23  ;;  %v398_v40 = vmul.f32 %v1076_v24, %v1105_v41  ;;  %v404_v44 = vmul.f32 %v1122_v51, %v1058_v6 }
  0x72   : > { %v427_v48 = vadd.f32 %v421_v35, %v391_v34  ;;  %v374_v49 = vadd.f32 %v368_v37, %v362_v36  ;;  %v416_v53 = vmul.f32 %v1079_v25, %v1107_v42  ;;  %v434_v54 = vmul.f32 %v354_v31, %v1081_v26 }
  0x73   : > { %v410_v55 = vadd.f32 %v404_v44, %v398_v40  ;;  %v440_v56 = vmul.f32 %v1087_v29, %v1151_v11  ;;  %v452_v24 = vmul.f32 %v358_v32, %v1083_v27  ;;  %v349_v6 = vadd.f32 %v1063_v12, %v1151_v11 }
  0x74   : > { %v463_v57 = vadd.f32 %v457_v38, %v427_v48  ;;  %v386_v58 = vadd.f32 %v380_v39, %v374_v49  ;;  %v355_v59 = vrot.slane %v1176_v46, 7  ;;  %v359_v60 = vrot.slane %v1176_v46, 1 }
  0x75   : > { %v422_v63 = vadd.f32 %v416_v53, %v410_v55  ;;  %v446_v25 = vadd.f32 %v440_v56, %v434_v54  ;;  %v363_v0 = vmul.f32 %v354_v31, %v1071_v22  ;;  %v369_v1 = vmul.f32 %v1069_v20, %v1151_v11 }
  0x76   : > { %617 = vst [vmem:[%s1155_s24 + $0x8] sm:$0xff] %v463_v57  ;;  %v392_v2 = vadd.f32 %v386_v58, %v348_v16  ;;  %v381_v3 = vmul.f32 %v358_v32, %v1073_v23  ;;  %v399_v4 = vmul.f32 %v353_v61, %v1105_v41  ;;  %v405_v7 = vmul.f32 %v1122_v51, %v1125_v52 }
  0x77   : > { %v458_v9 = vadd.f32 %v452_v24, %v446_v25  ;;  %v375_v10 = vadd.f32 %v369_v1, %v363_v0  ;;  %v417_v13 = vmul.f32 %v357_v62, %v1107_v42  ;;  %v435_v14 = vmul.f32 %v355_v59, %v1081_v26 }
  0x78   : > { %v428_v17 = vadd.f32 %v422_v63, %v392_v2  ;;  %v411_v15 = vadd.f32 %v405_v7, %v399_v4  ;;  %v441_v18 = vmul.f32 %v1087_v29, %v1176_v46  ;;  %v453_v19 = vmul.f32 %v359_v60, %v1083_v27 }
  0x79   : > { %v387_v5 = vadd.f32 %v381_v3, %v375_v10  ;;  %v350_v61 = vadd.f32 %v1063_v12, %v1176_v46  ;;  %v356_v52 = vrot.slane %v247_v8, 7  ;;  %v360_v16 = vrot.slane %v247_v8, 1 }
  0x7a   : > { %v464_v21 = vadd.f32 %v458_v9, %v428_v17  ;;  %v423_v28 = vadd.f32 %v417_v13, %v411_v15  ;;  %v447_v34 = vadd.f32 %v441_v18, %v435_v14  ;;  %v364_v62 = vmul.f32 %v355_v59, %v1071_v22 }
  0x7b   : > { %v393_v35 = vadd.f32 %v387_v5, %v349_v6  ;;  %v370_v36 = vmul.f32 %v1069_v20, %v1176_v46  ;;  %v382_v37 = vmul.f32 %v359_v60, %v1073_v23  ;;  %v400_v38 = vmul.f32 %v354_v31, %v1105_v41 }
  0x7c   : > { %618 = vst [vmem:[%s1155_s24 + $0x10] sm:$0xff] %v464_v21  ;;  %v459_v39 = vadd.f32 %v453_v19, %v447_v34  ;;  %v406_v40 = vmul.f32 %v1122_v51, %v1151_v11  ;;  %v418_v44 = vmul.f32 %v358_v32, %v1107_v42  ;;  %v436_v48 = vmul.f32 %v356_v52, %v1081_v26 }
  0x7d   : > { %v429_v49 = vadd.f32 %v423_v28, %v393_v35  ;;  %v376_v53 = vadd.f32 %v370_v36, %v364_v62  ;;  %v442_v54 = vmul.f32 %v1087_v29, %v247_v8  ;;  %v454_v55 = vmul.f32 %v360_v16, %v1083_v27 }
  0x7e   : > { %v412_v56 = vadd.f32 %v406_v40, %v400_v38  ;;  %v351_v24 = vadd.f32 %v1063_v12, %v247_v8  ;;  %v365_v31 = vmul.f32 %v356_v52, %v1071_v22  ;;  %v371_v6 = vmul.f32 %v1069_v20, %v247_v8 }
  0x7f   : > { %v465_v57 = vadd.f32 %v459_v39, %v429_v49  ;;  %v388_v11 = vadd.f32 %v382_v37, %v376_v53  ;;  %v448_v58 = vadd.f32 %v442_v54, %v436_v48  ;;  %v383_v32 = vmul.f32 %v360_v16, %v1073_v23 }
  0x80   : > { %v424_v63 = vadd.f32 %v418_v44, %v412_v56  ;;  %v377_v25 = vadd.f32 %v371_v6, %v365_v31  ;;  %v401_v0 = vmul.f32 %v355_v59, %v1105_v41  ;;  %v407_v1 = vmul.f32 %v1122_v51, %v1176_v46 }
  0x81   : > { %619 = vst [vmem:[%s1155_s24 + $0x18] sm:$0xff] %v465_v57  ;;  %v394_v2 = vadd.f32 %v388_v11, %v350_v61  ;;  %v460_v3 = vadd.f32 %v454_v55, %v448_v58  ;;  %v419_v4 = vmul.f32 %v359_v60, %v1107_v42  ;;  %v437_v7 = vmul.f32 %v1114_v47, %v1081_v26 }
  0x82   : > { %v389_v9 = vadd.f32 %v383_v32, %v377_v25  ;;  %v413_v10 = vadd.f32 %v407_v1, %v401_v0  ;;  %v443_v13 = vmul.f32 %v1087_v29, %v1095_v33  ;;  %v455_v14 = vmul.f32 %v1120_v50, %v1083_v27 }
  0x83   : > { %v430_v59 = vadd.f32 %v424_v63, %v394_v2  ;;  %v352_v46 = vadd.f32 %v1063_v12, %v1095_v33  ;;  %v366_v17 = vmul.f32 %v1114_v47, %v1071_v22  ;;  %v372_v60 = vmul.f32 %v1069_v20, %v1095_v33 }
  0x84   : > { %v395_v15 = vadd.f32 %v389_v9, %v351_v24  ;;  %v425_v18 = vadd.f32 %v419_v4, %v413_v10  ;;  %v449_v19 = vadd.f32 %v443_v13, %v437_v7  ;;  %v384_v5 = vmul.f32 %v1120_v50, %v1073_v23 }
  0x85   : > { %v466_v61 = vadd.f32 %v460_v3, %v430_v59  ;;  %v378_v21 = vadd.f32 %v372_v60, %v366_v17  ;;  %v402_v28 = vmul.f32 %v356_v52, %v1105_v41  ;;  %v408_v12 = vmul.f32 %v1122_v51, %v247_v8 }
  0x86   : > { %v431_v34 = vadd.f32 %v425_v18, %v395_v15  ;;  %v461_v22 = vadd.f32 %v455_v14, %v449_v19  ;;  %v420_v47 = vmul.f32 %v360_v16, %v1107_v42  ;;  %v438_v20 = vmul.f32 %v325_v43, %v1081_v26 }
  0x87   : > { %620 = vst [vmem:[%s1155_s24 + $0x20] sm:$0xff] %v466_v61  ;;  %v390_v33 = vadd.f32 %v384_v5, %v378_v21  ;;  %v414_v23 = vadd.f32 %v408_v12, %v402_v28  ;;  %v444_v41 = vmul.f32 %v1087_v29, %v1090_v30  ;;  %v456_v50 = vmul.f32 %v326_v45, %v1083_v27 }
  0x88   : > { %v467_v51 = vadd.f32 %v461_v22, %v431_v34 }
  0x89   : > { %v396_v42 = vadd.f32 %v390_v33, %v352_v46  ;;  %v426_v8 = vadd.f32 %v420_v47, %v414_v23  ;;  %v450_v52 = vadd.f32 %v444_v41, %v438_v20 }
  0x8a   : > { %621 = vst [vmem:[%s1155_s24 + $0x28] sm:$0xff] %v467_v51 }
  0x8b   : > { %v432_v26 = vadd.f32 %v426_v8, %v396_v42  ;;  %v462_v43 = vadd.f32 %v456_v50, %v450_v52 }
  0x8d   : > { %v468_v27 = vadd.f32 %v462_v43, %v432_v26 }
  0x8f   : > { %622 = vst [vmem:[%s1155_s24 + $0x30] sm:$0xff] %v468_v27 }
  0x90   : > { %781 = shalt.err (!%p778_p5)
}
  0x91   : > { %s782_s25 = scalar_lea.hbm %s1259_s26, 1024  ;;  %s786_s6 = scalar_lea.hbm %s1312_s3, 2048 }
  0x92   : > { %p783_p9 = scmp.ne.s32.totalorder %s1259_s26, %s782_s25  ;;  %p787_p3 = scmp.lt.u32.totalorder %s1259_s26, %s1312_s3 }
  0x93   : > { %p788_p7 = scmp.lt.u32.totalorder %s786_s6, %s782_s25  ;;  %p790_p4 = scmp.lt.u32.totalorder %s782_s25, %s1259_s26 }
  0x94   : > { %p784_p1 = pnand %p783_p9, %p982_p10 }
  0x95   : > { %p789_p13 = por %p788_p7, %p787_p3 }
  0x96   : > { %p785_p2 = pneg %p784_p1 }
  0x97   : > { %p791_p6 = por %p790_p4, %p789_p13 }
  0x99   : > { %p792_p8 = pnand %p791_p6, %p785_p2 }
  0x9b   : > { %795 = shalt.err (!%p792_p8)
}
  0x9c   : > { %s864_s24 = smov 128   ;;  %s865_s10 = smov 8  }
  0x9d   : > { %636 = dma.vmem_to_hbm [thread:$0]  (%p982_p10), %s1254_s9, 1024, %s1259_s26, %s477_s7, %s864_s24, %s864_s24, %s865_s10  }
  0x9e PF: > { %s506_s11 = sand.u32 1, %s834_s12   ;;  %p1330_p12 = scmp.ne.s32.totalorder %s1320_s23, 0 }
  0x9f   : > { %p1331_p11 = scmp.ge.s32.totalorder %s854_s17, 2  ;;  %s507_s18 = scalar_lea.sflag [#allocation4], %s506_s11 }
  0xa1   : > { %p647_p0 = pnand %p1331_p11, %p1330_p12 }
  0xa3   : > { %829 = dma.done.wait (!%p647_p0), %s507_s18, 1024  }
  0xa4   : > { %831 = vsyncadd (!%p647_p0), %s507_s18, 4294966272  ;;  %s20_s17 = sadd.s32 1, %s854_s17   ;;  %s1332_s12 = smov %s838_s13 }
  0xa5   : > { %p17_p5 = scmp.ge.s32.totalorder %s20_s17, 4   ;;  %s1333_s13 = smov %s842_s14 }
  0xa6   : > { %s1334_s14 = smov %s991_s5  ;;  %s1335_s15 = smov %s850_s16 }
  0xa7   : > { %s1336_s16 = smov %s1338_s28  ;;  %19 = sbr.rel (!%p17_p5) target bundleno = 7 (0x7), region = 87 }
  0xae   :  { %512 = vsyncpa [#allocation3], 1 }
  0xaf   :  { %514 = vsyncpa [#allocation3 + $0x1], 1 }
  0xb0   :  { %515 = vsyncpa [#allocation6], 1 }
  0xb1   :  { %516 = vsyncpa [#allocation4], 1 }
  0xb2   :  { %518 = vsyncpa [#allocation4 + $0x1], 1 }

</bundles_post_ra>
